<compile_context>
chip_gen: v5e
topology: v5e:2x2
jax: 0.10.0
libtpu: 0.0.40
codegen_flags: <defaults>
</compile_context>

<pallas_src>
import math

import jax
import jax.numpy as jnp
from jax.experimental import pallas as pl
from jax.experimental.pallas import tpu as pltpu


def _sinusoidal_kernel(time_ref, table_ref, out_ref):
    # time_ref:  (TB, 1)   f32 in VMEM
    # table_ref: (2, dim)  f32 in VMEM (resident: same block every grid step)
    #            row 0 = duplicated frequency table, row 1 = phase (0 | pi/2)
    # out_ref:   (TB, dim) in VMEM -> single full-width unmasked store
    table = table_ref[...]
    freqs_full = table[0:1, :]                      # (1, dim)
    phase = table[1:2, :]                           # (1, dim)
    emb = time_ref[...] * freqs_full + phase        # (TB, dim), f32
    out_ref[...] = jnp.sin(emb).astype(out_ref.dtype)


def _round_up(x: int, m: int) -> int:
    return -(-x // m) * m


def sinusoidal_position_embeddings(time: jax.Array, dim: int,
                                   block_b: int = 4096,
                                   out_dtype=jnp.float32) -> jax.Array:
    """time: (B,) float -> (B, dim) sinusoidal embeddings (sin half | cos half)."""
    assert dim % 2 == 0 and dim >= 4, "dim must be an even integer >= 4"
    B = time.shape[0]
    half_dim = dim // 2

    # Resident (2, dim) table: row 0 = [freqs, freqs], row 1 = [0, ..., pi/2, ...].
    scale = math.log(10000.0) / (half_dim - 1)
    freqs_half = jnp.exp(jnp.arange(half_dim, dtype=jnp.float32) * -scale)
    freqs_full = jnp.concatenate([freqs_half, freqs_half])
    phase = jnp.concatenate([jnp.zeros((half_dim,), jnp.float32),
                             jnp.full((half_dim,), 0.5 * math.pi, jnp.float32)])
    table = jnp.stack([freqs_full, phase])            # (2, dim) f32

    time_2d = time.astype(jnp.float32).reshape(B, 1)

    # --- Batch tile selection -------------------------------------------------
    # Double-buffered VMEM footprint per row:
    #   output tile: dim * 4 bytes (f32 accounting, conservative for bf16)
    #   time tile:   (TB, 1) pads to (TB, 128) in VMEM -> 128 * 4 bytes
    # Keep it under ~24 MiB so it fits every generation's scoped limit with
    # headroom (we raise the limit to 32 MiB explicitly below).
    VMEM_BUDGET = 24 * 1024 * 1024
    bytes_per_row_2buf = 2 * (dim * 4 + 128 * 4)
    vmem_cap_rows = max(8, (VMEM_BUDGET // bytes_per_row_2buf) // 8 * 8)

    TB = min(B, block_b, vmem_cap_rows)
    if B >= 16:
        # Ensure at least 2 grid steps so the "parallel" batch axis can shard
        # across v7x's two TensorCores (no effect on 1-TC v5e/v6e).
        TB = min(TB, _round_up(pl.cdiv(B, 2), 8))
    if TB < B:
        TB = max(8, (TB // 8) * 8)      # (8,128) sublane constraint
    else:
        TB = B                          # full-array block is always legal
    grid = (pl.cdiv(B, TB),)

    out_itemsize = jnp.dtype(out_dtype).itemsize
    cost = pl.CostEstimate(
        flops=2 * B * dim,                                 # mul + add
        transcendentals=B * dim,                           # one sin per element
        bytes_accessed=B * dim * out_itemsize + B * 4 + 2 * dim * 4,
    )

    return pl.pallas_call(
        _sinusoidal_kernel,
        out_shape=jax.ShapeDtypeStruct((B, dim), out_dtype),
        grid=grid,
        in_specs=[
            pl.BlockSpec((TB, 1), lambda i: (i, 0)),        # time tile
            pl.BlockSpec((2, dim), lambda i: (0, 0)),       # resident freq/phase table
        ],
        out_specs=pl.BlockSpec((TB, dim), lambda i: (i, 0)),
        compiler_params=pltpu.CompilerParams(
            dimension_semantics=("parallel",),
            vmem_limit_bytes=32 * 1024 * 1024,
        ),
        cost_estimate=cost,
    )(time_2d, table)


def _reference(time: jax.Array, dim: int) -> jax.Array:
    half_dim = dim // 2
    emb = math.log(10000.0) / (half_dim - 1)
    emb = jnp.exp(jnp.arange(half_dim, dtype=jnp.float32) * -emb)
    emb = time.astype(jnp.float32)[:, None] * emb[None, :]
    return jnp.concatenate([jnp.sin(emb), jnp.cos(emb)], axis=-1)


if __name__ == "__main__":
    key = jax.random.PRNGKey(0)

    # Small test shape consistent with the module (diffusion timesteps).
    B, dim = 8, 32
    time = jax.random.uniform(key, (B,), dtype=jnp.float32,
                              minval=0.0, maxval=1000.0)

    out = jax.block_until_ready(sinusoidal_position_embeddings(time, dim))
    ref = _reference(time, dim)
    assert out.shape == (B, dim)
    # cos half is computed as sin(x + pi/2); for x up to ~1000 rad the f32
    # rounding of (x + pi/2) gives up to ~6e-5 absolute deviation vs direct cos,
    # hence the 2e-4 tolerance (outputs are in [-1, 1]).
    assert jnp.max(jnp.abs(out - ref)) < 2e-4, "mismatch vs reference"

    # Also exercise the tiled (multi-grid-step) path with a larger batch.
    B2, dim2 = 1536, 128
    time2 = jax.random.uniform(jax.random.PRNGKey(1), (B2,), dtype=jnp.float32,
                               minval=0.0, maxval=1000.0)
    out2 = jax.block_until_ready(sinusoidal_position_embeddings(time2, dim2))
    ref2 = _reference(time2, dim2)
    assert out2.shape == (B2, dim2)
    assert jnp.max(jnp.abs(out2 - ref2)) < 2e-4, "mismatch vs reference (tiled)"

    print("KERNEL_OK")
</pallas_src>

<mosaic_0001>
module attributes {stable_mosaic.version = 11 : i64} {
  func.func @_sinusoidal_kernel(%arg0: i32, %arg1: memref<8x1xf32, #tpu.memory_space<vmem>>, %arg2: memref<2x32xf32, #tpu.memory_space<vmem>>, %arg3: memref<8x32xf32, #tpu.memory_space<vmem>>) attributes {dimension_semantics = [#tpu.dimension_semantics<parallel>], iteration_bounds = array<i64: 1>, scalar_prefetch = 0 : i64, scratch_operands = 0 : i64, tpu.core_type = #tpu.core_type<tc>, window_params = [{transform_indices = @transform_0, window_bounds = array<i64: 8, 1>}, {pipeline_mode = #tpu.pipeline_mode<synchronous>, transform_indices = @transform_1, window_bounds = array<i64: 2, 32>}, {transform_indices = @transform_2, window_bounds = array<i64: 8, 32>}]} {
    %c0 = arith.constant 0 : index
    %c0_0 = arith.constant 0 : index
    %0 = vector.load %arg2[%c0, %c0_0] : memref<2x32xf32, #tpu.memory_space<vmem>>, vector<2x32xf32>
    %1 = vector.extract_strided_slice %0 {offsets = [0, 0], sizes = [1, 32], strides = [1, 1]} : vector<2x32xf32> to vector<1x32xf32>
    %2 = vector.extract_strided_slice %0 {offsets = [1, 0], sizes = [1, 32], strides = [1, 1]} : vector<2x32xf32> to vector<1x32xf32>
    %c0_1 = arith.constant 0 : index
    %c0_2 = arith.constant 0 : index
    %3 = vector.load %arg1[%c0_1, %c0_2] : memref<8x1xf32, #tpu.memory_space<vmem>>, vector<8x1xf32>
    %4 = vector.broadcast %3 : vector<8x1xf32> to vector<8x32xf32>
    %5 = vector.broadcast %1 : vector<1x32xf32> to vector<8x32xf32>
    %6 = arith.mulf %4, %5 : vector<8x32xf32>
    %7 = vector.broadcast %2 : vector<1x32xf32> to vector<8x32xf32>
    %8 = arith.addf %6, %7 : vector<8x32xf32>
    %9 = math.sin %8 : vector<8x32xf32>
    %c0_3 = arith.constant 0 : index
    %c0_4 = arith.constant 0 : index
    %10 = vector.load %arg3[%c0_3, %c0_4] : memref<8x32xf32, #tpu.memory_space<vmem>>, vector<8x32xf32>
    tpu.vector_store %arg3[%c0_3, %c0_4], %9 {strides = array<i32>} : memref<8x32xf32, #tpu.memory_space<vmem>>, vector<8x32xf32>,
    return
  }
  func.func @transform_0(%arg0: i32) -> (i32, i32) {
    %c0_i32 = arith.constant 0 : i32
    %c0_i32_0 = arith.constant 0 : i32
    return %arg0, %c0_i32 : i32, i32
  }
  func.func @transform_1(%arg0: i32) -> (i32, i32) {
    %c0_i32 = arith.constant 0 : i32
    %c0_i32_0 = arith.constant 0 : i32
    %c0_i32_1 = arith.constant 0 : i32
    return %c0_i32, %c0_i32_0 : i32, i32
  }
  func.func @transform_2(%arg0: i32) -> (i32, i32) {
    %c0_i32 = arith.constant 0 : i32
    %c0_i32_0 = arith.constant 0 : i32
    return %arg0, %c0_i32 : i32, i32
  }
}

</mosaic_0001>

<bundles_post_ra>
// kernel: tpu_custom_call.1
= control target key start
LH: loop header
LB: loop body
LE: loop exit
PB: predicated region body
PF: predicated region fallthrough
CT: control target
= control target key end

     0   :  { %v234_v1 = vmov 0   ;;  %s327_s0 = inlined_call_operand.vmem [shape: f32[8,1], index: 0, kind: input, shape index: {}]   ;;  %s328_s1 = inlined_call_operand.vmem [shape: f32[2,32], index: 1, kind: input, shape index: {}]   ;;  %s329_s2 = inlined_call_operand.hbm [shape: f32[8,32], index: 2, kind: output, shape index: {}]  }
   0x1   :  { %v13_v0 = vld [vmem:[%s327_s0] sm:$0xff]  ;;  %207 = vset.pattern.permute.xlu0 %v234_v1 }
   0x2   :  { %16 = vperm.xlu0 %207, %v13_v0  }
   0x3   :  { %7 = vsyncpa [#allocation3], 0  ;;  %v12_v2 = vld [vmem:[%s328_s1] sm:$0x3]  ;;  %v235_v19 = vmov 683565275  }
   0x4   :  { %v19_v3 = vperm.slane %v12_v2, 0  ;;  %v21_v4 = vperm.slane %v12_v2, 1  ;;  %v236_v21 = vmov 2475754826   ;;  %v237_v24 = vmov 2131351028  }
   0x5   :  { %v238_v27 = vmov 2102212464   ;;  %v239_v30 = vmov 920167782   ;;  %v240_v33 = vmov 1326507024  }
   0x6   :  { %s241_s0 = smov [#allocation2]   ;;  %s187_s15 = sshll.u32 %s329_s2, 4  ;;  %s188_s15 = int_to_ptr.hbm [resolvable:$true] %s187_s15 }
   0x7   :  { %s185_s1 = sshll.u32 %s241_s0, 4  ;;  %s186_s1 = int_to_ptr.vmem [resolvable:$true] %s185_s1 }
  0x74   :  { %v17_v5 = vpop.permute.xlu0 %16 }
  0x75   :  { %v20_v6 = vmul.f32 %v19_v3, %v17_v5 }
  0x77   :  { %v264_v7 = vadd.f32 %v21_v4, %v20_v6 }
  0x79   :  { %v26_v8 = vand.u32 2139095040, %v264_v7  ;;  %v23_v11 = vand.u32 2147483647, %v264_v7  ;;  %vm25_vm12 = vcmp.lt.s32.totalorder %v264_v7, 0 }
  0x7b   :  { %v27_v9 = vshrl.u32 %v26_v8, 23  ;;  %v30_v13 = vand.u32 8388607, %v23_v11  ;;  %vm24_vm13 = vcmp.le.f32.partialorder %v23_v11, 0.7853982 }
  0x7d   :  { %v196_v10 = vadd.s32 4294967169, %v27_v9  ;;  %v31_v17 = vor.u32 8388608, %v30_v13 }
  0x7f   :  { %v33_v12 = vadd.s32 1, %v196_v10  ;;  %v281_v40 = vshll.u32 %v31_v17, 8 }
  0x81   :  { %vm34_vm0 = vcmp.gt.s32.totalorder %v33_v12, 0  ;;  %v72_v49 = vand.u32 65535, %v281_v40  ;;  %v73_v54 = vshrl.u32 %v281_v40, 16 }
  0x82   :  { %v35_v14 = vsel %vm34_vm0, %v33_v12, 0 }
  0x83   :  { %v37_v15 = vand.u32 31, %v35_v14  ;;  %v272_v18 = vshrl.u32 %v35_v14, 5 }
  0x85   :  { %v270_v16 = vsub.s32 32, %v37_v15  ;;  %v40_v20 = vshll.u32 %v235_v19, %v37_v15  ;;  %v43_v22 = vshll.u32 %v236_v21, %v37_v15  ;;  %v46_v26 = vshll.u32 %v237_v24, %v37_v15 }
  0x86   :  { %v49_v29 = vshll.u32 %v238_v27, %v37_v15  ;;  %v52_v32 = vshll.u32 %v239_v30, %v37_v15  ;;  %vm55_vm1 = vcmp.lt.s32.totalorder %v272_v18, 1  ;;  %vm58_vm2 = vcmp.lt.s32.totalorder %v272_v18, 4 }
  0x87   :  { %v41_v23 = vshrl.u32 %v236_v21, %v270_v16  ;;  %v44_v25 = vshrl.u32 %v237_v24, %v270_v16  ;;  %v47_v28 = vshrl.u32 %v238_v27, %v270_v16  ;;  %v50_v31 = vshrl.u32 %v239_v30, %v270_v16 }
  0x88   :  { %v53_v34 = vshrl.u32 %v240_v33, %v270_v16  ;;  %vm57_vm3 = vcmp.lt.s32.totalorder %v272_v18, 3  ;;  %vm56_vm4 = vcmp.lt.s32.totalorder %v272_v18, 2  ;;  %v39_v13 = vshrl.u32 %v235_v19, %v270_v16 }
  0x89   :  { %v42_v35 = vor.u32 %v41_v23, %v40_v20  ;;  %v45_v36 = vor.u32 %v44_v25, %v43_v22  ;;  %v48_v37 = vor.u32 %v47_v28, %v46_v26  ;;  %v51_v38 = vor.u32 %v50_v31, %v49_v29 }
  0x8a   :  { %v54_v39 = vor.u32 %v53_v34, %v52_v32 }
  0x8b   :  { %v63_v41 = vsel %vm55_vm1, %v42_v35, %v45_v36  ;;  %v67_v42 = vsel %vm55_vm1, %v45_v36, %v48_v37  ;;  %v64_v43 = vsel %vm58_vm2, %v51_v38, 920167782  ;;  %v60_v6 = vsel %vm58_vm2, %v48_v37, 2102212464 }
  0x8c   :  { %v68_v44 = vsel %vm58_vm2, %v54_v39, 1326507024  ;;  %v65_v45 = vsel %vm57_vm3, %v48_v37, %v64_v43  ;;  %v59_v23 = vsel %vm55_vm1, %v39_v13, %v42_v35  ;;  %v61_v24 = vsel %vm57_vm3, %v45_v36, %v60_v6 }
  0x8d   :  { %v69_v46 = vsel %vm57_vm3, %v51_v38, %v68_v44  ;;  %v66_v47 = vsel %vm56_vm4, %v63_v41, %v65_v45  ;;  %v62_v16 = vsel %vm56_vm4, %v59_v23, %v61_v24  ;;  %vm178_vm1 = vcmask 261120  }
  0x8e   :  { %v70_v48 = vsel %vm56_vm4, %v67_v42, %v69_v46  ;;  %v96_v52 = vand.u32 65535, %v66_v47  ;;  %v97_v53 = vshrl.u32 %v66_v47, 16  ;;  %v116_v31 = vmul.u32 %v281_v40, %v62_v16 }
  0x8f   :  { %v74_v50 = vand.u32 65535, %v70_v48  ;;  %v75_v51 = vshrl.u32 %v70_v48, 16  ;;  %vm166_vm2 = vweird.f32 %v264_v7 }
  0x90   :  { %v99_v56 = vmul.u32 %v97_v53, %v72_v49  ;;  %v100_v58 = vmul.u32 %v96_v52, %v73_v54  ;;  %v98_v61 = vmul.u32 %v96_v52, %v72_v49  ;;  %v101_v0 = vmul.u32 %v97_v53, %v73_v54 }
  0x91   :  { %v77_v55 = vmul.u32 %v75_v51, %v72_v49  ;;  %v78_v57 = vmul.u32 %v74_v50, %v73_v54  ;;  %v76_v59 = vmul.u32 %v74_v50, %v72_v49  ;;  %v79_v63 = vmul.u32 %v75_v51, %v73_v54 }
  0x92   :  { %v102_v62 = vshll.u32 %v99_v56, 16  ;;  %v104_v3 = vshll.u32 %v100_v58, 16  ;;  %v103_v21 = vshrl.u32 %v99_v56, 16  ;;  %v105_v27 = vshrl.u32 %v100_v58, 16 }
  0x93   :  { %v80_v60 = vshll.u32 %v77_v55, 16  ;;  %v82_v2 = vshll.u32 %v78_v57, 16  ;;  %v81_v17 = vshrl.u32 %v77_v55, 16  ;;  %v83_v25 = vshrl.u32 %v78_v57, 16 }
  0x94   :  { %vm106_vm6 = vc.u32 %v98_v61, %v102_v62  ;;  %v108_v5 = vadd.s32 %v102_v62, %v98_v61 }
  0x95   :  { %vm84_vm5 = vc.u32 %v76_v59, %v80_v60  ;;  %v86_v4 = vadd.s32 %v80_v60, %v76_v59  ;;  %v107_v9 = vsel %vm106_vm6, 1, %v234_v1 }
  0x96   :  { %v85_v8 = vsel %vm84_vm5, 1, %v234_v1  ;;  %v109_v12 = vadd.s32 %v107_v9, %v101_v0  ;;  %vm110_vm8 = vc.u32 %v108_v5, %v104_v3  ;;  %v112_v29 = vadd.s32 %v108_v5, %v104_v3 }
  0x97   :  { %v87_v10 = vadd.s32 %v85_v8, %v79_v63  ;;  %vm88_vm7 = vc.u32 %v86_v4, %v82_v2  ;;  %v111_v15 = vsel %vm110_vm8, 1, %v234_v1 }
  0x98   :  { %v89_v14 = vsel %vm88_vm7, 1, %v234_v1  ;;  %v113_v22 = vadd.s32 %v111_v15, %v109_v12 }
  0x99   :  { %v91_v20 = vadd.s32 %v89_v14, %v87_v10 }
  0x9a   :  { %v114_v28 = vadd.s32 %v113_v22, %v103_v21 }
  0x9b   :  { %v92_v26 = vadd.s32 %v91_v20, %v81_v17 }
  0x9c   :  { %v115_v1 = vadd.s32 %v114_v28, %v105_v27 }
  0x9d   :  { %v93_v19 = vadd.s32 %v92_v26, %v83_v25 }
  0x9e   :  { %v119_v30 = vadd.s32 1, %v115_v1 }
  0x9f   :  { %vm118_vm9 = vc.u32 %v93_v19, %v112_v29  ;;  %v117_v43 = vadd.s32 %v112_v29, %v93_v19 }
  0xa0   :  { %v120_v32 = vsel %vm118_vm9, %v119_v30, %v115_v1 }
  0xa1   :  { %v121_v33 = vadd.s32 %v120_v32, %v116_v31 }
  0xa3   :  { %v122_v34 = vadd.s32 536870912, %v121_v33 }
  0xa5   :  { %v123_v35 = vshrl.u32 %v122_v34, 30 }
  0xa7   :  { %v124_v37 = vshll.u32 %v123_v35, 30  ;;  %v147_v56 = vsub.s32 4, %v123_v35 }
  0xa9   :  { %v125_v36 = vsub.s32 %v121_v33, %v124_v37  ;;  %v148_v61 = vsel %vm25_vm12, %v147_v56, %v123_v35 }
  0xaa   :  { %v150_v0 = vsel %vm24_vm13, 0, %v148_v61 }
  0xab   :  { %vm126_vm10 = vcmp.lt.s32.totalorder %v125_v36, 0  ;;  %v127_v38 = vsub.s32 0, %v125_v36  ;;  %v167_v6 = vadd.s32 3, %v150_v0 }
  0xad   :  { %v128_v39 = vsel %vm126_vm10, %v127_v38, %v125_v36  ;;  %v168_v12 = vand.u32 3, %v167_v6 }
  0xae   :  { %v129_v41 = vclz %v128_v39 }
  0xaf   :  { %vm170_vm14 = vcmp.eq.s32.totalorder %v168_v12, 0  ;;  %vm173_vm15 = vcmp.eq.s32.totalorder %v168_v12, 2  ;;  %vm169_vm0 = vcmp.lt.s32.totalorder %v168_v12, 2 }
  0xb0   :  { %v197_v42 = vadd.s32 4294967294, %v129_v41 }
  0xb2   :  { %vm198_vm11 = vcmp.lt.s32.totalorder %v197_v42, 0 }
  0xb3   :  { %v132_v18 = vsel %vm198_vm11, 0, %v197_v42 }
  0xb4   :  { %v133_v44 = vsub.s32 32, %v132_v18  ;;  %v137_v45 = vsub.s32 4294967266, %v132_v18  ;;  %v134_v46 = vshll.u32 %v125_v36, %v132_v18 }
  0xb6   :  { %v135_v47 = vshrl.u32 %v117_v43, %v133_v44  ;;  %v138_v48 = vadd.s32 127, %v137_v45 }
  0xb8   :  { %v136_v40 = vor.u32 %v135_v47, %v134_v46  ;;  %v139_v49 = vshll.u32 %v138_v48, 23 }
  0xba   :  { %v140_v50 = vor.u32 4788187, %v139_v49  ;;  %v143_v52 = vcvt.s32.f32 %v136_v40 }
  0xbc   :  { %v141_v51 = vand.u32 2147483647, %v140_v50 }
  0xbe   :  { %v144_v53 = vmul.f32 %v143_v52, %v141_v51 }
  0xc0   :  { %v145_v54 = vxor.u32 2147483648, %v144_v53 }
  0xc2   :  { %v146_v55 = vsel %vm25_vm12, %v145_v54, %v144_v53 }
  0xc3   :  { %v149_v57 = vsel %vm24_vm13, %v264_v7, %v146_v55 }
  0xc4   :  { %v151_v58 = vmul.f32 %v149_v57, %v149_v57 }
  0xc6   :  { %v152_v59 = vmul.f32 -0.001358992, %v151_v58  ;;  %v159_v60 = vmul.f32 -0.00019511016, %v151_v58 }
  0xc8   :  { %v153_v62 = vadd.f32 0.041655596, %v152_v59  ;;  %v160_v63 = vadd.f32 0.008332121, %v159_v60 }
  0xca   :  { %v154_v2 = vmul.f32 %v153_v62, %v151_v58  ;;  %v161_v3 = vmul.f32 %v160_v63, %v151_v58 }
  0xcc   :  { %v155_v4 = vadd.f32 -0.4999988, %v154_v2  ;;  %v162_v5 = vadd.f32 -0.16666654, %v161_v3 }
  0xce   :  { %v156_v8 = vmul.f32 %v155_v4, %v151_v58  ;;  %v163_v9 = vmul.f32 %v162_v5, %v151_v58 }
  0xd0   :  { %v157_v10 = vadd.f32 1.0, %v156_v8  ;;  %v164_v11 = vadd.f32 1.0, %v163_v9 }
  0xd2   :  { %v165_v13 = vmul.f32 %v164_v11, %v149_v57  ;;  %v174_v14 = vxor.u32 2147483648, %v157_v10 }
  0xd4   :  { %v171_v15 = vxor.u32 2147483648, %v165_v13  ;;  %v175_v20 = vsel %vm173_vm15, %v174_v14, %v165_v13 }
  0xd6   :  { %v172_v17 = vsel %vm170_vm14, %v157_v10, %v171_v15 }
  0xd7   :  { %v176_v21 = vsel %vm169_vm0, %v172_v17, %v175_v20 }
  0xd8   :  { %v177_v22 = vsel %vm166_vm2, nan, %v176_v21 }
  0xd9   :  { %179 = vst.msk [vmem:[#allocation2] sm:$0xff] %vm178_vm1, %v177_v22 }
  0xda   :  { %190 = dma.vmem_to_hbm [thread:$0]  %s186_s1, 128, %s188_s15, [#allocation3]  }
  0xdb   :  { %232 = dma.done.wait [#allocation3], 128  }
  0xdc   :  { %233 = vsyncadd [#allocation3], 4294967168 }
  0xdd   :  { %195 = vsyncpa [#allocation3], 1 }

</bundles_post_ra>
